<compile_context>
chip_gen: v6e
topology: v6e:2x2x1
jax: 0.10.0
libtpu: 0.0.40
codegen_flags: <defaults>
</compile_context>

<pallas_src>
import functools

import jax
import jax.numpy as jnp
from jax.experimental import pallas as pl
from jax.experimental.pallas import tpu as pltpu


# ---------------------------------------------------------------------------
# Small helpers
# ---------------------------------------------------------------------------

def _nbytes(shape, dtype):
    n = 1
    for d in shape:
        n *= int(d)
    return n * jnp.dtype(dtype).itemsize


def _vmem_limit(block_bytes):
    """Explicit scoped-VMEM limit: double-buffered blocks + margin, clamped to a
    range that is safe on v5e/v6e (128 MiB physical) and v7x (64 MiB physical)."""
    need = 2 * block_bytes + (2 << 20)
    return int(min(max(need, 32 << 20), 64 << 20))


def _layernorm(y, g, b, eps=1e-5):
    mu = jnp.mean(y, axis=-1, keepdims=True)
    var = jnp.mean((y - mu) * (y - mu), axis=-1, keepdims=True)
    return (y - mu) * jax.lax.rsqrt(var + eps) * g + b


def _attn_core(q_all, k_all, v_all, wo, heads, head_dim):
    """Per-head attention + output projection accumulated over heads.

    q_all : (Tq, E) f32  (1/sqrt(D) already folded into wq/bq)
    k_all : (Tk, E) f32
    v_all : (Tk, E) f32
    wo    : (E, E)  bf16
    returns (Tq, E) f32
    """
    qb = q_all.astype(jnp.bfloat16)          # hoisted casts (once, not per head)
    kb = k_all.astype(jnp.bfloat16)
    vb = v_all.astype(jnp.bfloat16)
    tq, emb = q_all.shape
    acc = jnp.zeros((tq, emb), jnp.float32)
    for h in range(heads):                   # heads in-body; weights resident once
        sl = slice(h * head_dim, (h + 1) * head_dim)
        s = jnp.einsum('qd,kd->qk', qb[:, sl], kb[:, sl],
                       preferred_element_type=jnp.float32)            # (Tq, Tk)
        s = s - jnp.max(s, axis=-1, keepdims=True)
        p = jnp.exp(s)
        # approx reciprocal (EUP slot); inference-grade accuracy.
        p = p * pl.reciprocal(jnp.sum(p, axis=-1, keepdims=True), approx=True)
        ctx = jnp.dot(p.astype(jnp.bfloat16), vb[:, sl],
                      preferred_element_type=jnp.float32)              # (Tq, D)
        acc = acc + jnp.dot(ctx.astype(jnp.bfloat16), wo[sl, :],
                            preferred_element_type=jnp.float32)        # (Tq, E)
    return acc


# ---------------------------------------------------------------------------
# Kernels
# ---------------------------------------------------------------------------

def _self_attn_ln_kernel(x_ref, wqkv_ref, bqkv_ref, wo_ref, bo_ref, g_ref, b_ref,
                         o_ref, *, heads, head_dim):
    """Self-attention (Q=K=V=x) + residual + LayerNorm for one batch element."""
    x = x_ref[0]                                         # (T, E) f32
    emb = x.shape[-1]
    xb = x.astype(jnp.bfloat16)
    # Single fused QKV projection: MXU width = 3E.
    qkv = jnp.dot(xb, wqkv_ref[...],
                  preferred_element_type=jnp.float32) + bqkv_ref[...]  # (T, 3E)
    q_all = qkv[:, :emb]
    k_all = qkv[:, emb:2 * emb]
    v_all = qkv[:, 2 * emb:]
    attn = _attn_core(q_all, k_all, v_all, wo_ref[...], heads, head_dim)
    y = attn + bo_ref[...] + x                           # out-proj bias + residual
    o_ref[0] = _layernorm(y, g_ref[...], b_ref[...]).astype(o_ref.dtype)


def _cross_attn_ln_kernel(x_ref, enc_ref, wq_ref, bq_ref, wkv_ref, bkv_ref,
                          wo_ref, bo_ref, g_ref, b_ref, o_ref, *, heads, head_dim):
    """Cross-attention (Q from decoder state, K/V from encoder) + residual + LN."""
    x = x_ref[0]                                         # (Tq, E) f32 (residual)
    enc = enc_ref[0]                                     # (Tk, E) f32
    emb = x.shape[-1]
    q_all = jnp.dot(x.astype(jnp.bfloat16), wq_ref[...],
                    preferred_element_type=jnp.float32) + bq_ref[...]    # (Tq, E)
    # Fused K/V projection: MXU width = 2E.
    kv = jnp.dot(enc.astype(jnp.bfloat16), wkv_ref[...],
                 preferred_element_type=jnp.float32) + bkv_ref[...]      # (Tk, 2E)
    k_all = kv[:, :emb]
    v_all = kv[:, emb:]
    attn = _attn_core(q_all, k_all, v_all, wo_ref[...], heads, head_dim)
    y = attn + bo_ref[...] + x
    o_ref[0] = _layernorm(y, g_ref[...], b_ref[...]).astype(o_ref.dtype)


def _ffn_ln_kernel(x_ref, w1_ref, b1_ref, w2_ref, b2_ref, g_ref, bb_ref, o_ref):
    """Linear -> exact GELU -> Linear, fused with residual add + LayerNorm.
    Operates on a row tile of the flattened (B*T, E) activations."""
    x = x_ref[...]                                                     # (R, E) f32
    h = jnp.dot(x.astype(jnp.bfloat16), w1_ref[...],
                preferred_element_type=jnp.float32) + b1_ref[...]      # (R, H)
    # nn.GELU() default = exact erf form
    h = 0.5 * h * (1.0 + jax.lax.erf(h * 0.7071067811865475))
    y = jnp.dot(h.astype(jnp.bfloat16), w2_ref[...],
                preferred_element_type=jnp.float32) + b2_ref[...]      # (R, E)
    y = y + x                                                          # residual
    o_ref[...] = _layernorm(y, g_ref[...], bb_ref[...]).astype(o_ref.dtype)


# ---------------------------------------------------------------------------
# Wrappers
# ---------------------------------------------------------------------------

def _self_attn_block(x, p, heads):
    B, T, E = x.shape
    D = E // heads
    kernel = functools.partial(_self_attn_ln_kernel, heads=heads, head_dim=D)
    block_bytes = (2 * _nbytes((1, T, E), jnp.float32)          # x in + out
                   + _nbytes((E, 3 * E), jnp.bfloat16)          # fused wqkv
                   + _nbytes((1, 3 * E), jnp.float32)           # fused bqkv
                   + _nbytes((E, E), jnp.bfloat16)              # wo
                   + 3 * _nbytes((1, E), jnp.float32))          # bo, ln_g, ln_b
    return pl.pallas_call(
        kernel,
        out_shape=jax.ShapeDtypeStruct((B, T, E), jnp.float32),
        grid=(B,),
        in_specs=[
            pl.BlockSpec((1, T, E), lambda b: (b, 0, 0)),       # x (Q=K=V source + residual, DMA'd once)
            pl.BlockSpec((E, 3 * E), lambda b: (0, 0)),         # fused wqkv (scale folded into q part)
            pl.BlockSpec((1, 3 * E), lambda b: (0, 0)),         # fused bqkv
            pl.BlockSpec((E, E), lambda b: (0, 0)),             # wo
            pl.BlockSpec((1, E), lambda b: (0, 0)),             # bo
            pl.BlockSpec((1, E), lambda b: (0, 0)),             # LN gamma
            pl.BlockSpec((1, E), lambda b: (0, 0)),             # LN beta
        ],
        out_specs=pl.BlockSpec((1, T, E), lambda b: (b, 0, 0)),
        compiler_params=pltpu.CompilerParams(
            dimension_semantics=("parallel",),
            vmem_limit_bytes=_vmem_limit(block_bytes)),
    )(x, p["wqkv"], p["bqkv"], p["wo"], p["bo"], p["ln_g"], p["ln_b"])


def _cross_attn_block(x, enc, p, heads):
    B, Tq, E = x.shape
    Tk = enc.shape[1]
    D = E // heads
    kernel = functools.partial(_cross_attn_ln_kernel, heads=heads, head_dim=D)
    block_bytes = (2 * _nbytes((1, Tq, E), jnp.float32)
                   + _nbytes((1, Tk, E), jnp.float32)
                   + _nbytes((E, E), jnp.bfloat16)              # wq
                   + _nbytes((E, 2 * E), jnp.bfloat16)          # fused wkv
                   + _nbytes((1, 2 * E), jnp.float32)
                   + _nbytes((E, E), jnp.bfloat16)              # wo
                   + 4 * _nbytes((1, E), jnp.float32))
    return pl.pallas_call(
        kernel,
        out_shape=jax.ShapeDtypeStruct((B, Tq, E), jnp.float32),
        grid=(B,),
        in_specs=[
            pl.BlockSpec((1, Tq, E), lambda b: (b, 0, 0)),      # decoder state (Q + residual)
            pl.BlockSpec((1, Tk, E), lambda b: (b, 0, 0)),      # encoder output (K/V source)
            pl.BlockSpec((E, E), lambda b: (0, 0)),             # wq (pre-scaled)
            pl.BlockSpec((1, E), lambda b: (0, 0)),             # bq (pre-scaled)
            pl.BlockSpec((E, 2 * E), lambda b: (0, 0)),         # fused wkv
            pl.BlockSpec((1, 2 * E), lambda b: (0, 0)),         # fused bkv
            pl.BlockSpec((E, E), lambda b: (0, 0)),             # wo
            pl.BlockSpec((1, E), lambda b: (0, 0)),             # bo
            pl.BlockSpec((1, E), lambda b: (0, 0)),             # LN gamma
            pl.BlockSpec((1, E), lambda b: (0, 0)),             # LN beta
        ],
        out_specs=pl.BlockSpec((1, Tq, E), lambda b: (b, 0, 0)),
        compiler_params=pltpu.CompilerParams(
            dimension_semantics=("parallel",),
            vmem_limit_bytes=_vmem_limit(block_bytes)),
    )(x, enc, p["wq"], p["bq"], p["wkv"], p["bkv"], p["wo"], p["bo"],
      p["ln_g"], p["ln_b"])


def _ffn_block(x, p):
    """Fused FFN + residual + LayerNorm over row tiles of the flattened rows."""
    B, T, E = x.shape
    H = p["w1"].shape[1]
    rows = B * T
    x2 = x.reshape(rows, E)

    row_tile = rows if rows <= 512 else 512        # 512 rows amortize per-step overhead
    grid = (pl.cdiv(rows, row_tile),)

    block_bytes = (2 * _nbytes((row_tile, E), jnp.float32)      # x in + out
                   + _nbytes((E, H), jnp.bfloat16)
                   + _nbytes((1, H), jnp.float32)
                   + _nbytes((H, E), jnp.bfloat16)
                   + 3 * _nbytes((1, E), jnp.float32)
                   + _nbytes((row_tile, H), jnp.float32))       # GELU intermediate
    out = pl.pallas_call(
        _ffn_ln_kernel,
        out_shape=jax.ShapeDtypeStruct((rows, E), jnp.float32),
        grid=grid,
        in_specs=[
            pl.BlockSpec((row_tile, E), lambda r: (r, 0)),
            pl.BlockSpec((E, H), lambda r: (0, 0)),
            pl.BlockSpec((1, H), lambda r: (0, 0)),
            pl.BlockSpec((H, E), lambda r: (0, 0)),
            pl.BlockSpec((1, E), lambda r: (0, 0)),
            pl.BlockSpec((1, E), lambda r: (0, 0)),
            pl.BlockSpec((1, E), lambda r: (0, 0)),
        ],
        out_specs=pl.BlockSpec((row_tile, E), lambda r: (r, 0)),
        compiler_params=pltpu.CompilerParams(
            dimension_semantics=("parallel",),
            vmem_limit_bytes=_vmem_limit(block_bytes)),
    )(x2, p["w1"], p["b1"], p["w2"], p["b2"], p["ln_g"], p["ln_b"])
    return out.reshape(B, T, E)


def decoder_block(x, encoder_out, params, heads):
    """Forward pass of the PyTorch DecoderBlock (dropout == identity at inference)."""
    # Sub-layer 1: self-attention + residual + LayerNorm (one kernel)
    self_atn = _self_attn_block(x, params["self_attn"], heads)
    # Sub-layer 2: encoder-decoder attention (Q from decoder state, K/V from encoder)
    ed_atn = _cross_attn_block(self_atn, encoder_out, params["cross_attn"], heads)
    # Sub-layer 3: position-wise feed-forward + residual + LayerNorm (one kernel)
    return _ffn_block(ed_atn, params["ffn"])


# ---------------------------------------------------------------------------
# Deterministic parameter construction (host-side layout prep is free)
# ---------------------------------------------------------------------------

def _make_attn_params(key, emb_dim, heads, self_attention):
    d = emb_dim // heads
    scale = 1.0 / float(d) ** 0.5          # folded into wq / bq (no in-kernel scaling)
    ks = jax.random.split(key, 8)
    s = 0.05
    wq = s * jax.random.normal(ks[0], (emb_dim, emb_dim), jnp.float32)
    bq = s * jax.random.normal(ks[1], (1, emb_dim), jnp.float32)
    wk = s * jax.random.normal(ks[2], (emb_dim, emb_dim), jnp.float32)
    bk = s * jax.random.normal(ks[3], (1, emb_dim), jnp.float32)
    wv = s * jax.random.normal(ks[4], (emb_dim, emb_dim), jnp.float32)
    bv = s * jax.random.normal(ks[5], (1, emb_dim), jnp.float32)
    wo = s * jax.random.normal(ks[6], (emb_dim, emb_dim), jnp.float32)
    bo = s * jax.random.normal(ks[7], (1, emb_dim), jnp.float32)
    common = {
        "wo": wo.astype(jnp.bfloat16),
        "bo": bo,
        "ln_g": jnp.ones((1, emb_dim), jnp.float32),
        "ln_b": jnp.zeros((1, emb_dim), jnp.float32),
    }
    if self_attention:
        return dict(common,
                    wqkv=jnp.concatenate([wq * scale, wk, wv], axis=1).astype(jnp.bfloat16),
                    bqkv=jnp.concatenate([bq * scale, bk, bv], axis=1))
    return dict(common,
                wq=(wq * scale).astype(jnp.bfloat16),
                bq=bq * scale,
                wkv=jnp.concatenate([wk, wv], axis=1).astype(jnp.bfloat16),
                bkv=jnp.concatenate([bk, bv], axis=1))


def _make_ffn_params(key, emb_dim, hid_dim):
    k1, k2, k3, k4 = jax.random.split(key, 4)
    s = 0.05
    return {
        "w1": (s * jax.random.normal(k1, (emb_dim, hid_dim), jnp.float32)).astype(jnp.bfloat16),
        "b1": s * jax.random.normal(k2, (1, hid_dim), jnp.float32),
        "w2": (s * jax.random.normal(k3, (hid_dim, emb_dim), jnp.float32)).astype(jnp.bfloat16),
        "b2": s * jax.random.normal(k4, (1, emb_dim), jnp.float32),
        "ln_g": jnp.ones((1, emb_dim), jnp.float32),
        "ln_b": jnp.zeros((1, emb_dim), jnp.float32),
    }


def make_params(key, emb_dim, hid_dim, heads):
    k_sa, k_ca, k_ff = jax.random.split(key, 3)
    return {
        "self_attn": _make_attn_params(k_sa, emb_dim, heads, self_attention=True),
        "cross_attn": _make_attn_params(k_ca, emb_dim, heads, self_attention=False),
        "ffn": _make_ffn_params(k_ff, emb_dim, hid_dim),
    }


# ---------------------------------------------------------------------------
# Example run
# ---------------------------------------------------------------------------

if __name__ == "__main__":
    # Small but lane-dense shapes (E, hid multiples of 128; seq multiple of 8).
    B, T_DEC, T_ENC = 2, 16, 16
    EMB_DIM, HEADS, HID_DIM = 128, 4, 256

    key = jax.random.PRNGKey(0)
    k_x, k_enc, k_p = jax.random.split(key, 3)

    x = jax.random.normal(k_x, (B, T_DEC, EMB_DIM), jnp.float32)          # decoder input
    encoder_out = jax.random.normal(k_enc, (B, T_ENC, EMB_DIM), jnp.float32)
    params = make_params(k_p, EMB_DIM, HID_DIM, HEADS)

    out = decoder_block(x, encoder_out, params, HEADS)
    out = jax.block_until_ready(out)

    assert out.shape == (B, T_DEC, EMB_DIM)
    assert jnp.all(jnp.isfinite(out))
    print("KERNEL_OK")
</pallas_src>

<mosaic_0001>
module attributes {stable_mosaic.version = 11 : i64} {
  func.func @_self_attn_ln_kernel(%arg0: i32, %arg1: memref<1x16x128xf32, #tpu.memory_space<vmem>>, %arg2: memref<128x384xbf16, #tpu.memory_space<vmem>>, %arg3: memref<1x384xf32, #tpu.memory_space<vmem>>, %arg4: memref<128x128xbf16, #tpu.memory_space<vmem>>, %arg5: memref<1x128xf32, #tpu.memory_space<vmem>>, %arg6: memref<1x128xf32, #tpu.memory_space<vmem>>, %arg7: memref<1x128xf32, #tpu.memory_space<vmem>>, %arg8: memref<1x16x128xf32, #tpu.memory_space<vmem>>) attributes {dimension_semantics = [#tpu.dimension_semantics<parallel>], iteration_bounds = array<i64: 2>, scalar_prefetch = 0 : i64, scratch_operands = 0 : i64, tpu.core_type = #tpu.core_type<tc>, window_params = [{transform_indices = @transform_0, window_bounds = array<i64: 1, 16, 128>}, {pipeline_mode = #tpu.pipeline_mode<synchronous>, transform_indices = @transform_1, window_bounds = array<i64: 128, 384>}, {pipeline_mode = #tpu.pipeline_mode<synchronous>, transform_indices = @transform_2, window_bounds = array<i64: 1, 384>}, {pipeline_mode = #tpu.pipeline_mode<synchronous>, transform_indices = @transform_3, window_bounds = array<i64: 128, 128>}, {pipeline_mode = #tpu.pipeline_mode<synchronous>, transform_indices = @transform_4, window_bounds = array<i64: 1, 128>}, {pipeline_mode = #tpu.pipeline_mode<synchronous>, transform_indices = @transform_5, window_bounds = array<i64: 1, 128>}, {pipeline_mode = #tpu.pipeline_mode<synchronous>, transform_indices = @transform_6, window_bounds = array<i64: 1, 128>}, {transform_indices = @transform_7, window_bounds = array<i64: 1, 16, 128>}]} {
    %c0 = arith.constant 0 : index
    %c0_0 = arith.constant 0 : index
    %c0_1 = arith.constant 0 : index
    %0 = vector.load %arg1[%c0, %c0_0, %c0_1] : memref<1x16x128xf32, #tpu.memory_space<vmem>>, vector<1x16x128xf32>
    %1 = vector.shape_cast %0 : vector<1x16x128xf32> to vector<16x128xf32>
    %2 = arith.truncf %1 : vector<16x128xf32> to vector<16x128xbf16>
    %c0_2 = arith.constant 0 : index
    %c0_3 = arith.constant 0 : index
    %3 = vector.load %arg2[%c0_2, %c0_3] : memref<128x384xbf16, #tpu.memory_space<vmem>>, vector<128x384xbf16>
    %cst = arith.constant dense<0.000000e+00> : vector<16x384xf32>
    %4 = tpu.matmul %2, %3, %cst {dimension_numbers = #tpu.dot_dimension_numbers<[1], [0], [0], [1], [0, 0, 1, 1], [], []>} : vector<16x128xbf16>, vector<128x384xbf16>, vector<16x384xf32> -> vector<16x384xf32>
    %c0_4 = arith.constant 0 : index
    %c0_5 = arith.constant 0 : index
    %5 = vector.load %arg3[%c0_4, %c0_5] : memref<1x384xf32, #tpu.memory_space<vmem>>, vector<1x384xf32>
    %6 = vector.broadcast %5 : vector<1x384xf32> to vector<16x384xf32>
    %7 = arith.addf %4, %6 : vector<16x384xf32>
    %8 = vector.extract_strided_slice %7 {offsets = [0, 0], sizes = [16, 128], strides = [1, 1]} : vector<16x384xf32> to vector<16x128xf32>
    %9 = vector.extract_strided_slice %7 {offsets = [0, 128], sizes = [16, 128], strides = [1, 1]} : vector<16x384xf32> to vector<16x128xf32>
    %10 = vector.extract_strided_slice %7 {offsets = [0, 256], sizes = [16, 128], strides = [1, 1]} : vector<16x384xf32> to vector<16x128xf32>
    %c0_6 = arith.constant 0 : index
    %c0_7 = arith.constant 0 : index
    %11 = vector.load %arg4[%c0_6, %c0_7] : memref<128x128xbf16, #tpu.memory_space<vmem>>, vector<128x128xbf16>
    %12 = arith.truncf %8 : vector<16x128xf32> to vector<16x128xbf16>
    %13 = arith.truncf %9 : vector<16x128xf32> to vector<16x128xbf16>
    %14 = arith.truncf %10 : vector<16x128xf32> to vector<16x128xbf16>
    %cst_8 = arith.constant 0.000000e+00 : f32
    %15 = vector.broadcast %cst_8 : f32 to vector<16x128xf32>
    %16 = vector.extract_strided_slice %12 {offsets = [0, 0], sizes = [16, 32], strides = [1, 1]} : vector<16x128xbf16> to vector<16x32xbf16>
    %17 = vector.extract_strided_slice %13 {offsets = [0, 0], sizes = [16, 32], strides = [1, 1]} : vector<16x128xbf16> to vector<16x32xbf16>
    "tpu.trace_start"() <{level = 10 : i32, message = "qd,kd->qk"}> : () -> ()
    %cst_9 = arith.constant dense<0.000000e+00> : vector<16x16xf32>
    %18 = tpu.matmul %16, %17, %cst_9 {dimension_numbers = #tpu.dot_dimension_numbers<[1], [1], [0], [0], [0, 0, 1, 0], [], []>} : vector<16x32xbf16>, vector<16x32xbf16>, vector<16x16xf32> -> vector<16x16xf32>
    "tpu.trace_stop"() : () -> ()
    %cst_10 = arith.constant dense<0xFF800000> : vector<16xf32>
    %19 = vector.multi_reduction <maximumf>, %18, %cst_10 [1] : vector<16x16xf32> to vector<16xf32>
    %20 = vector.shape_cast %19 : vector<16xf32> to vector<16x1xf32>
    %21 = vector.broadcast %20 : vector<16x1xf32> to vector<16x16xf32>
    %22 = arith.subf %18, %21 : vector<16x16xf32>
    %23 = math.exp %22 : vector<16x16xf32>
    %cst_11 = arith.constant dense<0.000000e+00> : vector<16xf32>
    %24 = vector.multi_reduction <add>, %23, %cst_11 [1] : vector<16x16xf32> to vector<16xf32>
    %25 = vector.shape_cast %24 : vector<16xf32> to vector<16x1xf32>
    %26 = tpu.reciprocal %25 {approx = true} : vector<16x1xf32> -> vector<16x1xf32>
    %27 = vector.broadcast %26 : vector<16x1xf32> to vector<16x16xf32>
    %28 = arith.mulf %23, %27 : vector<16x16xf32>
    %29 = arith.truncf %28 : vector<16x16xf32> to vector<16x16xbf16>
    %30 = vector.extract_strided_slice %14 {offsets = [0, 0], sizes = [16, 32], strides = [1, 1]} : vector<16x128xbf16> to vector<16x32xbf16>
    %cst_12 = arith.constant dense<0.000000e+00> : vector<16x32xf32>
    %31 = tpu.matmul %29, %30, %cst_12 {dimension_numbers = #tpu.dot_dimension_numbers<[1], [0], [0], [1], [0, 0, 1, 1], [], []>} : vector<16x16xbf16>, vector<16x32xbf16>, vector<16x32xf32> -> vector<16x32xf32>
    %32 = arith.truncf %31 : vector<16x32xf32> to vector<16x32xbf16>
    %33 = vector.extract_strided_slice %11 {offsets = [0, 0], sizes = [32, 128], strides = [1, 1]} : vector<128x128xbf16> to vector<32x128xbf16>
    %cst_13 = arith.constant dense<0.000000e+00> : vector<16x128xf32>
    %34 = tpu.matmul %32, %33, %cst_13 {dimension_numbers = #tpu.dot_dimension_numbers<[1], [0], [0], [1], [0, 0, 1, 1], [], []>} : vector<16x32xbf16>, vector<32x128xbf16>, vector<16x128xf32> -> vector<16x128xf32>
    %35 = arith.addf %15, %34 : vector<16x128xf32>
    %36 = vector.extract_strided_slice %12 {offsets = [0, 32], sizes = [16, 32], strides = [1, 1]} : vector<16x128xbf16> to vector<16x32xbf16>
    %37 = vector.extract_strided_slice %13 {offsets = [0, 32], sizes = [16, 32], strides = [1, 1]} : vector<16x128xbf16> to vector<16x32xbf16>
    "tpu.trace_start"() <{level = 10 : i32, message = "qd,kd->qk"}> : () -> ()
    %cst_14 = arith.constant dense<0.000000e+00> : vector<16x16xf32>
    %38 = tpu.matmul %36, %37, %cst_14 {dimension_numbers = #tpu.dot_dimension_numbers<[1], [1], [0], [0], [0, 0, 1, 0], [], []>} : vector<16x32xbf16>, vector<16x32xbf16>, vector<16x16xf32> -> vector<16x16xf32>
    "tpu.trace_stop"() : () -> ()
    %cst_15 = arith.constant dense<0xFF800000> : vector<16xf32>
    %39 = vector.multi_reduction <maximumf>, %38, %cst_15 [1] : vector<16x16xf32> to vector<16xf32>
    %40 = vector.shape_cast %39 : vector<16xf32> to vector<16x1xf32>
    %41 = vector.broadcast %40 : vector<16x1xf32> to vector<16x16xf32>
    %42 = arith.subf %38, %41 : vector<16x16xf32>
    %43 = math.exp %42 : vector<16x16xf32>
    %cst_16 = arith.constant dense<0.000000e+00> : vector<16xf32>
    %44 = vector.multi_reduction <add>, %43, %cst_16 [1] : vector<16x16xf32> to vector<16xf32>
    %45 = vector.shape_cast %44 : vector<16xf32> to vector<16x1xf32>
    %46 = tpu.reciprocal %45 {approx = true} : vector<16x1xf32> -> vector<16x1xf32>
    %47 = vector.broadcast %46 : vector<16x1xf32> to vector<16x16xf32>
    %48 = arith.mulf %43, %47 : vector<16x16xf32>
    %49 = arith.truncf %48 : vector<16x16xf32> to vector<16x16xbf16>
    %50 = vector.extract_strided_slice %14 {offsets = [0, 32], sizes = [16, 32], strides = [1, 1]} : vector<16x128xbf16> to vector<16x32xbf16>
    %cst_17 = arith.constant dense<0.000000e+00> : vector<16x32xf32>
    %51 = tpu.matmul %49, %50, %cst_17 {dimension_numbers = #tpu.dot_dimension_numbers<[1], [0], [0], [1], [0, 0, 1, 1], [], []>} : vector<16x16xbf16>, vector<16x32xbf16>, vector<16x32xf32> -> vector<16x32xf32>
    %52 = arith.truncf %51 : vector<16x32xf32> to vector<16x32xbf16>
    %53 = vector.extract_strided_slice %11 {offsets = [32, 0], sizes = [32, 128], strides = [1, 1]} : vector<128x128xbf16> to vector<32x128xbf16>
    %cst_18 = arith.constant dense<0.000000e+00> : vector<16x128xf32>
    %54 = tpu.matmul %52, %53, %cst_18 {dimension_numbers = #tpu.dot_dimension_numbers<[1], [0], [0], [1], [0, 0, 1, 1], [], []>} : vector<16x32xbf16>, vector<32x128xbf16>, vector<16x128xf32> -> vector<16x128xf32>
    %55 = arith.addf %35, %54 : vector<16x128xf32>
    %56 = vector.extract_strided_slice %12 {offsets = [0, 64], sizes = [16, 32], strides = [1, 1]} : vector<16x128xbf16> to vector<16x32xbf16>
    %57 = vector.extract_strided_slice %13 {offsets = [0, 64], sizes = [16, 32], strides = [1, 1]} : vector<16x128xbf16> to vector<16x32xbf16>
    "tpu.trace_start"() <{level = 10 : i32, message = "qd,kd->qk"}> : () -> ()
    %cst_19 = arith.constant dense<0.000000e+00> : vector<16x16xf32>
    %58 = tpu.matmul %56, %57, %cst_19 {dimension_numbers = #tpu.dot_dimension_numbers<[1], [1], [0], [0], [0, 0, 1, 0], [], []>} : vector<16x32xbf16>, vector<16x32xbf16>, vector<16x16xf32> -> vector<16x16xf32>
    "tpu.trace_stop"() : () -> ()
    %cst_20 = arith.constant dense<0xFF800000> : vector<16xf32>
    %59 = vector.multi_reduction <maximumf>, %58, %cst_20 [1] : vector<16x16xf32> to vector<16xf32>
    %60 = vector.shape_cast %59 : vector<16xf32> to vector<16x1xf32>
    %61 = vector.broadcast %60 : vector<16x1xf32> to vector<16x16xf32>
    %62 = arith.subf %58, %61 : vector<16x16xf32>
    %63 = math.exp %62 : vector<16x16xf32>
    %cst_21 = arith.constant dense<0.000000e+00> : vector<16xf32>
    %64 = vector.multi_reduction <add>, %63, %cst_21 [1] : vector<16x16xf32> to vector<16xf32>
    %65 = vector.shape_cast %64 : vector<16xf32> to vector<16x1xf32>
    %66 = tpu.reciprocal %65 {approx = true} : vector<16x1xf32> -> vector<16x1xf32>
    %67 = vector.broadcast %66 : vector<16x1xf32> to vector<16x16xf32>
    %68 = arith.mulf %63, %67 : vector<16x16xf32>
    %69 = arith.truncf %68 : vector<16x16xf32> to vector<16x16xbf16>
    %70 = vector.extract_strided_slice %14 {offsets = [0, 64], sizes = [16, 32], strides = [1, 1]} : vector<16x128xbf16> to vector<16x32xbf16>
    %cst_22 = arith.constant dense<0.000000e+00> : vector<16x32xf32>
    %71 = tpu.matmul %69, %70, %cst_22 {dimension_numbers = #tpu.dot_dimension_numbers<[1], [0], [0], [1], [0, 0, 1, 1], [], []>} : vector<16x16xbf16>, vector<16x32xbf16>, vector<16x32xf32> -> vector<16x32xf32>
    %72 = arith.truncf %71 : vector<16x32xf32> to vector<16x32xbf16>
    %73 = vector.extract_strided_slice %11 {offsets = [64, 0], sizes = [32, 128], strides = [1, 1]} : vector<128x128xbf16> to vector<32x128xbf16>
    %cst_23 = arith.constant dense<0.000000e+00> : vector<16x128xf32>
    %74 = tpu.matmul %72, %73, %cst_23 {dimension_numbers = #tpu.dot_dimension_numbers<[1], [0], [0], [1], [0, 0, 1, 1], [], []>} : vector<16x32xbf16>, vector<32x128xbf16>, vector<16x128xf32> -> vector<16x128xf32>
    %75 = arith.addf %55, %74 : vector<16x128xf32>
    %76 = vector.extract_strided_slice %12 {offsets = [0, 96], sizes = [16, 32], strides = [1, 1]} : vector<16x128xbf16> to vector<16x32xbf16>
    %77 = vector.extract_strided_slice %13 {offsets = [0, 96], sizes = [16, 32], strides = [1, 1]} : vector<16x128xbf16> to vector<16x32xbf16>
    "tpu.trace_start"() <{level = 10 : i32, message = "qd,kd->qk"}> : () -> ()
    %cst_24 = arith.constant dense<0.000000e+00> : vector<16x16xf32>
    %78 = tpu.matmul %76, %77, %cst_24 {dimension_numbers = #tpu.dot_dimension_numbers<[1], [1], [0], [0], [0, 0, 1, 0], [], []>} : vector<16x32xbf16>, vector<16x32xbf16>, vector<16x16xf32> -> vector<16x16xf32>
    "tpu.trace_stop"() : () -> ()
    %cst_25 = arith.constant dense<0xFF800000> : vector<16xf32>
    %79 = vector.multi_reduction <maximumf>, %78, %cst_25 [1] : vector<16x16xf32> to vector<16xf32>
    %80 = vector.shape_cast %79 : vector<16xf32> to vector<16x1xf32>
    %81 = vector.broadcast %80 : vector<16x1xf32> to vector<16x16xf32>
    %82 = arith.subf %78, %81 : vector<16x16xf32>
    %83 = math.exp %82 : vector<16x16xf32>
    %cst_26 = arith.constant dense<0.000000e+00> : vector<16xf32>
    %84 = vector.multi_reduction <add>, %83, %cst_26 [1] : vector<16x16xf32> to vector<16xf32>
    %85 = vector.shape_cast %84 : vector<16xf32> to vector<16x1xf32>
    %86 = tpu.reciprocal %85 {approx = true} : vector<16x1xf32> -> vector<16x1xf32>
    %87 = vector.broadcast %86 : vector<16x1xf32> to vector<16x16xf32>
    %88 = arith.mulf %83, %87 : vector<16x16xf32>
    %89 = arith.truncf %88 : vector<16x16xf32> to vector<16x16xbf16>
    %90 = vector.extract_strided_slice %14 {offsets = [0, 96], sizes = [16, 32], strides = [1, 1]} : vector<16x128xbf16> to vector<16x32xbf16>
    %cst_27 = arith.constant dense<0.000000e+00> : vector<16x32xf32>
    %91 = tpu.matmul %89, %90, %cst_27 {dimension_numbers = #tpu.dot_dimension_numbers<[1], [0], [0], [1], [0, 0, 1, 1], [], []>} : vector<16x16xbf16>, vector<16x32xbf16>, vector<16x32xf32> -> vector<16x32xf32>
    %92 = arith.truncf %91 : vector<16x32xf32> to vector<16x32xbf16>
    %93 = vector.extract_strided_slice %11 {offsets = [96, 0], sizes = [32, 128], strides = [1, 1]} : vector<128x128xbf16> to vector<32x128xbf16>
    %cst_28 = arith.constant dense<0.000000e+00> : vector<16x128xf32>
    %94 = tpu.matmul %92, %93, %cst_28 {dimension_numbers = #tpu.dot_dimension_numbers<[1], [0], [0], [1], [0, 0, 1, 1], [], []>} : vector<16x32xbf16>, vector<32x128xbf16>, vector<16x128xf32> -> vector<16x128xf32>
    %95 = arith.addf %75, %94 : vector<16x128xf32>
    %c0_29 = arith.constant 0 : index
    %c0_30 = arith.constant 0 : index
    %96 = vector.load %arg5[%c0_29, %c0_30] : memref<1x128xf32, #tpu.memory_space<vmem>>, vector<1x128xf32>
    %97 = vector.broadcast %96 : vector<1x128xf32> to vector<16x128xf32>
    %98 = arith.addf %95, %97 : vector<16x128xf32>
    %99 = arith.addf %98, %1 : vector<16x128xf32>
    %c0_31 = arith.constant 0 : index
    %c0_32 = arith.constant 0 : index
    %100 = vector.load %arg6[%c0_31, %c0_32] : memref<1x128xf32, #tpu.memory_space<vmem>>, vector<1x128xf32>
    %c0_33 = arith.constant 0 : index
    %c0_34 = arith.constant 0 : index
    %101 = vector.load %arg7[%c0_33, %c0_34] : memref<1x128xf32, #tpu.memory_space<vmem>>, vector<1x128xf32>
    %cst_35 = arith.constant dense<0.000000e+00> : vector<16xf32>
    %102 = vector.multi_reduction <add>, %99, %cst_35 [1] : vector<16x128xf32> to vector<16xf32>
    %103 = vector.shape_cast %102 : vector<16xf32> to vector<16x1xf32>
    %cst_36 = arith.constant 1.280000e+02 : f32
    %104 = vector.broadcast %cst_36 : f32 to vector<16x1xf32>
    %105 = arith.divf %103, %104 : vector<16x1xf32>
    %106 = vector.broadcast %105 : vector<16x1xf32> to vector<16x128xf32>
    %107 = arith.subf %99, %106 : vector<16x128xf32>
    %108 = vector.broadcast %105 : vector<16x1xf32> to vector<16x128xf32>
    %109 = arith.subf %99, %108 : vector<16x128xf32>
    %110 = arith.mulf %107, %109 : vector<16x128xf32>
    %cst_37 = arith.constant dense<0.000000e+00> : vector<16xf32>
    %111 = vector.multi_reduction <add>, %110, %cst_37 [1] : vector<16x128xf32> to vector<16xf32>
    %112 = vector.shape_cast %111 : vector<16xf32> to vector<16x1xf32>
    %cst_38 = arith.constant 1.280000e+02 : f32
    %113 = vector.broadcast %cst_38 : f32 to vector<16x1xf32>
    %114 = arith.divf %112, %113 : vector<16x1xf32>
    %115 = vector.broadcast %105 : vector<16x1xf32> to vector<16x128xf32>
    %116 = arith.subf %99, %115 : vector<16x128xf32>
    %cst_39 = arith.constant 9.99999974E-6 : f32
    %117 = vector.broadcast %cst_39 : f32 to vector<16x1xf32>
    %118 = arith.addf %114, %117 : vector<16x1xf32>
    %119 = math.rsqrt %118 : vector<16x1xf32>
    %120 = vector.broadcast %119 : vector<16x1xf32> to vector<16x128xf32>
    %121 = arith.mulf %116, %120 : vector<16x128xf32>
    %122 = vector.broadcast %100 : vector<1x128xf32> to vector<16x128xf32>
    %123 = arith.mulf %121, %122 : vector<16x128xf32>
    %124 = vector.broadcast %101 : vector<1x128xf32> to vector<16x128xf32>
    %125 = arith.addf %123, %124 : vector<16x128xf32>
    %c0_40 = arith.constant 0 : index
    %c0_41 = arith.constant 0 : index
    %c0_42 = arith.constant 0 : index
    %126 = vector.load %arg8[%c0_40, %c0_41, %c0_42] : memref<1x16x128xf32, #tpu.memory_space<vmem>>, vector<1x16x128xf32>
    %127 = vector.shape_cast %126 : vector<1x16x128xf32> to vector<16x128xf32>
    %128 = vector.shape_cast %125 : vector<16x128xf32> to vector<1x16x128xf32>
    tpu.vector_store %arg8[%c0_40, %c0_41, %c0_42], %128 {strides = array<i32>} : memref<1x16x128xf32, #tpu.memory_space<vmem>>, vector<1x16x128xf32>,
    return
  }
  func.func @transform_0(%arg0: i32) -> (i32, i32, i32) {
    %c0_i32 = arith.constant 0 : i32
    %c0_i32_0 = arith.constant 0 : i32
    %c0_i32_1 = arith.constant 0 : i32
    return %arg0, %c0_i32, %c0_i32_0 : i32, i32, i32
  }
  func.func @transform_1(%arg0: i32) -> (i32, i32) {
    %c0_i32 = arith.constant 0 : i32
    %c0_i32_0 = arith.constant 0 : i32
    %c0_i32_1 = arith.constant 0 : i32
    return %c0_i32, %c0_i32_0 : i32, i32
  }
  func.func @transform_2(%arg0: i32) -> (i32, i32) {
    %c0_i32 = arith.constant 0 : i32
    %c0_i32_0 = arith.constant 0 : i32
    %c0_i32_1 = arith.constant 0 : i32
    return %c0_i32, %c0_i32_0 : i32, i32
  }
  func.func @transform_3(%arg0: i32) -> (i32, i32) {
    %c0_i32 = arith.constant 0 : i32
    %c0_i32_0 = arith.constant 0 : i32
    %c0_i32_1 = arith.constant 0 : i32
    return %c0_i32, %c0_i32_0 : i32, i32
  }
  func.func @transform_4(%arg0: i32) -> (i32, i32) {
    %c0_i32 = arith.constant 0 : i32
    %c0_i32_0 = arith.constant 0 : i32
    %c0_i32_1 = arith.constant 0 : i32
    return %c0_i32, %c0_i32_0 : i32, i32
  }
  func.func @transform_5(%arg0: i32) -> (i32, i32) {
    %c0_i32 = arith.constant 0 : i32
    %c0_i32_0 = arith.constant 0 : i32
    %c0_i32_1 = arith.constant 0 : i32
    return %c0_i32, %c0_i32_0 : i32, i32
  }
  func.func @transform_6(%arg0: i32) -> (i32, i32) {
    %c0_i32 = arith.constant 0 : i32
    %c0_i32_0 = arith.constant 0 : i32
    %c0_i32_1 = arith.constant 0 : i32
    return %c0_i32, %c0_i32_0 : i32, i32
  }
  func.func @transform_7(%arg0: i32) -> (i32, i32, i32) {
    %c0_i32 = arith.constant 0 : i32
    %c0_i32_0 = arith.constant 0 : i32
    %c0_i32_1 = arith.constant 0 : i32
    return %arg0, %c0_i32, %c0_i32_0 : i32, i32, i32
  }
}

</mosaic_0001>

<bundles_post_ra>
// kernel: tpu_custom_call.1
= control target key start
LH: loop header
LB: loop body
LE: loop exit
PB: predicated region body
PF: predicated region fallthrough
CT: control target
= control target key end

     0   :  { %s2400_s0 = inlined_call_operand.hbm [shape: f32[2,16,128], index: 0, kind: input, shape index: {}]   ;;  %s2401_s1 = inlined_call_operand.hbm [shape: bf16[128,384], index: 1, kind: input, shape index: {}]   ;;  %s2402_s2 = inlined_call_operand.vmem [shape: f32[1,384], index: 2, kind: input, shape index: {}]   ;;  %s2403_s3 = inlined_call_operand.hbm [shape: bf16[128,128], index: 3, kind: input, shape index: {}]   ;;  %s2404_s4 = inlined_call_operand.vmem [shape: f32[1,128], index: 4, kind: input, shape index: {}]   ;;  %s2405_s5 = inlined_call_operand.vmem [shape: f32[1,128], index: 5, kind: input, shape index: {}]   ;;  %s2406_s6 = inlined_call_operand.vmem [shape: f32[1,128], index: 6, kind: input, shape index: {}]   ;;  %s2407_s7 = inlined_call_operand.hbm [shape: f32[2,16,128], index: 7, kind: output, shape index: {}]  }
   0x1   :  { %2412 = sst [smem:[#allocation12_spill]] %s2401_s1 }
   0x2   :  { %12 = vsyncpa [#allocation3], 0 }
   0x3   :  { %14 = vsyncpa [#allocation3 + $0x1], 0 }
   0x4   :  { %15 = vsyncpa [#allocation6], 0 }
   0x5   :  { %16 = vsyncpa [#allocation4], 0 }
   0x6   :  { %18 = vsyncpa [#allocation4 + $0x1], 0  ;;  %s2053_s24 = smov 0   ;;  %s2055_s25 = smov 0  }
   0x7   :  { %s2057_s26 = smov 0   ;;  %s2059_s27 = smov 0  }
   0x8 LB: > { %s2074_s28 = sadd.s32 4294967295, %s1993_s27   ;;  %s1484_s29 = sadd.s32 4294967294, %s1993_s27   ;;  %s1993_s27 = sphi %s2059_s27, %s2431_s27   ;;  %s1989_s26 = sphi %s2057_s26, %s2430_s26   ;;  %s1985_s25 = sphi %s2055_s25, %s2429_s25   ;;  %s1981_s24 = sphi %s2053_s24, %s2428_s24  }
   0x9   : > { %p44_p0 = scmp.ne.s32.totalorder %s1985_s25, %s1981_s24  ;;  %p2408_p1 = scmp.eq.s32.totalorder %s2074_s28, 0 }
   0xa   : > { %p200_p3 = scmp.eq.s32.totalorder %s1484_s29, 1  ;;  %p1485_p5 = scmp.ge.s32.totalorder %s1993_s27, 1 }
   0xb   : > { %p2083_p4 = por %p2408_p1, %p44_p0  ;;  %p207_p7 = scmp.lt.s32.totalorder %s1993_s27, 3 }
   0xc   : > { %p2088_p6 = por %p200_p3, %p44_p0  ;;  %s1995_s10 = smov [#allocation5]  }
   0xd   : > { %s2413_s30 = scalar_select %p2083_p4, 1, 0 }
   0xe   : > { %s2414_s8 = scalar_select %p2088_p6, 1, 0 }
   0xf   : > { %p2093_p8 = pnand %p1485_p5, %p207_p7  ;;  %s219_s11 = sshll.u32 %s1995_s10, 4  ;;  %s220_s11 = int_to_ptr.vmem [resolvable:$true] %s219_s11 }
  0x10   : > { %s1996_s13 = smov [#allocation7]   ;;  %s1856_s15 = scalar_lea.vmem %s220_s11, 3072 }
  0x11   : > { %s2415_s9 = scalar_select %p2093_p8, 1, 0 }
  0x12   : > { %p1700_p9 = pneg %p2093_p8  ;;  %s235_s14 = sshll.u32 %s1996_s13, 4  ;;  %s236_s14 = int_to_ptr.vmem [resolvable:$true] %s235_s14 }
  0x13   : > { %p1857_p13 = scmp.ne.s32.totalorder %s220_s11, %s1856_s15  ;;  %p1864_p5 = scmp.lt.s32.totalorder %s220_s11, %s220_s11 }
  0x14   : > { %p2102_p11 = pnand %p1700_p9, %p2408_p1  ;;  %p1865_p7 = scmp.lt.s32.totalorder %s1856_s15, %s1856_s15 }
  0x16   : > { %p1847_p12 = pneg %p2102_p11  ;;  %p1866_p10 = por %p1865_p7, %p1864_p5 }
  0x18   : > { %p1859_p0 = pnand %p1857_p13, %p1847_p12 }
  0x1a   : > { %p1860_p3 = pneg %p1859_p0 }
  0x1c   : > { %p1867_p9 = pnand %p1866_p10, %p1860_p3 }
  0x1e   : > { %1870 = shalt.err (!%p1867_p9)
}
  0x1f   : > { %s1997_s16 = smov 192   ;;  %s1998_s17 = smov 12  }
  0x20   : > { %s2417_s1 = sld [smem:[#allocation12_spill]]  ;;  %s1882_s20 = scalar_lea.vmem %s236_s14, 1024 }
  0x21   : > { %p1883_p1 = scmp.ne.s32.totalorder %s236_s14, %s1882_s20  ;;  %p1890_p2 = scmp.lt.s32.totalorder %s236_s14, %s236_s14 }
  0x22   : > { %p1891_p6 = scmp.lt.s32.totalorder %s1882_s20, %s1882_s20 }
  0x23   : > { %p1885_p13 = pnand %p1883_p1, %p1847_p12 }
  0x24   : > { %p1892_p5 = por %p1891_p6, %p1890_p2 }
  0x25   : > { %p1886_p0 = pneg %p1885_p13 }
  0x26   : > { %1703 = dma.hbm_to_vmem [thread:$0]  (!%p2102_p11), %s2417_s1, 3072, %s220_s11, [#allocation6], %s1997_s16, %s1997_s16, %s1998_s17  }
  0x27   : > { %p1893_p10 = pnand %p1892_p5, %p1886_p0 }
  0x29   : > { %1896 = shalt.err (!%p1893_p10)
}
  0x2a   : > { %s1999_s21 = smov 64   ;;  %s2000_s22 = smov 4  }
  0x2b   : > { %1706 = dma.hbm_to_vmem [thread:$0]  (!%p2102_p11), %s2403_s3, 1024, %s236_s14, [#allocation6], %s1999_s21, %s1999_s21, %s2000_s22  }
  0x2c   : > { %s2125_s10 = sadd.s32 1, %s1993_s27   ;;  %s31_s13 = sadd.s32 1, %s1989_s26 }
  0x2d   : > { %s28_s11 = ssub.s32 %s1993_s27, %s2125_s10  ;;  %p38_p2 = scmp.ne.s32.totalorder %s1989_s26, %s1985_s25 }
  0x2e   : > { %p29_p1 = scmp.eq.s32.totalorder %s28_s11, 0  ;;  %p39_p6 = scmp.eq.s32.totalorder %s1993_s27, 0 }
  0x2f   : > { %p2418_p3 = scmp.eq.s32.totalorder %s2074_s28, 1  ;;  %p1717_p9 = scmp.lt.s32.totalorder %s1993_s27, 2 }
  0x30   : > { %s2134_s15 = scalar_select %p29_p1, %s1989_s26, %s31_s13  }
  0x31   : > { %p40_p12 = por %p39_p6, %p38_p2  ;;  %p2138_p7 = por %p2418_p3, %p38_p2 }
  0x32   : > { %s258_s12 = sand.u32 1, %s1989_s26   ;;  %s1549_s14 = sshll.u32 %s1993_s27, 8 }
  0x33   : > { %s2419_s16 = scalar_select %p2138_p7, 1, 0 }
  0x34   : > { %s1489_s17 = sshll.u32 %s258_s12, 4  ;;  %s2148_s20 = scalar_lea.hbm %s2400_s0, %s1549_s14 }
  0x35   : > { %s262_s21 = scalar_lea.vmem [#allocation2], %s1489_s17  ;;  %p2152_p11 = pnand %p1717_p9, %p40_p12 }
  0x36   : > { %s269_s22 = sshll.u32 %s262_s21, 4  ;;  %s2156_s29 = scalar_lea.sflag [#allocation3], %s258_s12  ;;  %s2150_s22 = int_to_ptr.vmem [resolvable:$true] %s269_s22 }
  0x37   : > { %s1897_s11 = scalar_lea.hbm %s2148_s20, 256  ;;  %p1899_p0 = pneg %p2152_p11 }
  0x38   : > { %p1898_p13 = scmp.ne.s32.totalorder %s2148_s20, %s1897_s11  ;;  %s1902_s17 = scalar_lea.hbm %s2400_s0, 512 }
  0x39   : > { %p1903_p1 = scmp.lt.s32.totalorder %s2148_s20, %s2400_s0  ;;  %p1904_p2 = scmp.lt.s32.totalorder %s1902_s17, %s1897_s11 }
  0x3a   : > { %p1900_p5 = pnand %p1899_p0, %p1898_p13 }
  0x3b   : > { %p1905_p6 = por %p1904_p2, %p1903_p1 }
  0x3c   : > { %p1901_p10 = pneg %p1900_p5 }
  0x3e   : > { %p1906_p12 = pnand %p1905_p6, %p1901_p10 }
  0x40   : > { %1909 = shalt.err (!%p1906_p12)
}
  0x41   : > { %s1910_s12 = scalar_lea.vmem %s2150_s22, 256  ;;  %s2001_s21 = smov [#allocation2]  }
  0x42   : > { %p1911_p3 = scmp.ne.s32.totalorder %s2150_s22, %s1910_s12  ;;  %s1915_s1 = sshll.u32 %s2001_s21, 4  ;;  %s1916_s1 = int_to_ptr.vmem [resolvable:$false] %s1915_s1 }
  0x43   : > { %s1917_s13 = scalar_lea.vmem %s1916_s1, 512  ;;  %p1918_p5 = scmp.lt.s32.totalorder %s2150_s22, %s1916_s1 }
  0x44   : > { %p1913_p9 = pnand %p1911_p3, %p1899_p0  ;;  %p1919_p7 = scmp.lt.s32.totalorder %s1917_s13, %s1910_s12 }
  0x46   : > { %p1914_p13 = pneg %p1913_p9  ;;  %p1920_p4 = por %p1919_p7, %p1918_p5 }
  0x48   : > { %p1921_p8 = pnand %p1920_p4, %p1914_p13 }
  0x4a   : > { %1924 = shalt.err (!%p1921_p8)
}
  0x4b   : > { %s2002_s11 = smov 128   ;;  %s2003_s14 = smov 8  }
  0x4c   : > { %1710 = dma.hbm_to_vmem [thread:$0]  (!%p2152_p11), %s2148_s20, 256, %s2150_s22, %s2156_s29, %s2002_s11, %s2002_s11, %s2003_s14  }
  0x4d   : > { %p2421_p0 = scmp.ne.s32.totalorder %s2415_s9, 0 }
  0x4e   : > { %s2180_s17 = sand.u32 (!%p2421_p0), 1, %s1985_s25   ;;  %p2422_p4 = scmp.ne.s32.totalorder (!%p2421_p0), %s2413_s30, 0 }
  0x4f   : > { %281 = sbr.rel (%p2421_p0) target bundleno = 2917 (0xb65), region = 48  ;;  %s1493_s1 = sshll.u32 (!%p2421_p0), %s2180_s17, 4 }
  0x50   : > { %s284_s18 = scalar_lea.sflag (!%p2421_p0), [#allocation3], %s2180_s17  ;;  %s2186_s19 = scalar_lea.vmem (!%p2421_p0), [#allocation2], %s1493_s1 }
  0x54   : > { %1968 = dma.done.wait (%p2422_p4), %s284_s18, 256  }
  0x55   : > { %1970 = vsyncadd (%p2422_p4), %s284_s18, 4294967040  ;;  %p2423_p8 = scmp.eq.s32.totalorder %s2074_s28, 0 }
  0x57   : > { %1972 = dma.done.wait (%p2423_p8), [#allocation6], 4096   ;;  %p2424_p7 = pmov %p2423_p8 }
  0x58   : > { %v2004_v0 = vmov 0   ;;  %v1769_v1 = vld [vmem:[#allocation5 + $0xac] ss:$12 sps:$4 sm:$0xff]   ;;  %v1771_v2 = vld [vmem:[#allocation5 + $0xa8] ss:$12 sps:$4 sm:$0xff]   ;;  %v2005_v20 = vmov 0.0   ;;  %v364_v21 = vlaneseq }
  0x59   : > { %1974 = vsyncadd (%p2424_p7), [#allocation6], 4294963200  ;;  %539 = vmatprep.mubr.bf16.mxu0 %v2004_v0  ;;  %507 = vmatprep.subr.bf16.mxu0 %v1769_v1  ;;  %v1772_v3 = vld [vmem:[#allocation5 + $0x94] ss:$12 sps:$4 sm:$0xff]   ;;  %v1774_v4 = vld [vmem:[#allocation5 + $0x90] ss:$12 sps:$4 sm:$0xff]  }
  0x5a   : > { %508 = vmatpush1.bf16.msra.mxu0 %v1771_v2  ;;  %v1775_v5 = vld [vmem:[#allocation5 + $0x7c] ss:$12 sps:$4 sm:$0xff]   ;;  %v1777_v6 = vld [vmem:[#allocation5 + $0x78] ss:$12 sps:$4 sm:$0xff]   ;;  %v1780_v8 = vld [vmem:[#allocation5 + $0x60] ss:$12 sps:$4 sm:$0xff]   ;;  %1588 = vmatprep.subr.bf16.mxu1 %v2005_v20 }
  0x5b   : > { %509 = vmatprep.subr.bf16.mxu0 %v1772_v3  ;;  %v1778_v7 = vld [vmem:[#allocation5 + $0x64] ss:$12 sps:$4 sm:$0xff]   ;;  %v1781_v9 = vld [vmem:[#allocation5 + $0x4c] ss:$12 sps:$4 sm:$0xff]   ;;  %v1783_v10 = vld [vmem:[#allocation5 + $0x48] ss:$12 sps:$4 sm:$0xff]  }
  0x5c   : > { %v1784_v11 = vld [vmem:[#allocation5 + $0x34] ss:$12 sps:$4 sm:$0xff]   ;;  %v1786_v12 = vld [vmem:[#allocation5 + $0x30] ss:$12 sps:$4 sm:$0xff]   ;;  %v1789_v14 = vld [vmem:[#allocation5 + $0x18] ss:$12 sps:$4 sm:$0xff]  }
  0x5d   : > { %v1787_v13 = vld [vmem:[#allocation5 + $0x1c] ss:$12 sps:$4 sm:$0xff]   ;;  %v1790_v15 = vld [vmem:[#allocation5 + $0x4] ss:$12 sps:$4 sm:$0xff]   ;;  %v1792_v16 = vld [vmem:[#allocation5] ss:$12 sps:$4 sm:$0xff]  }
  0x5e   : > { %510 = vmatpush1.bf16.msra.mxu0 %v1774_v4  ;;  %v2197_v17 = vld [vmem:[%s2186_s19] sm:$0xff]  ;;  %v2200_v18 = vld [vmem:[%s2186_s19 + $0x8] sm:$0xff]  ;;  %vm2006_vm0 = vmmov 0   ;;  %v2210_v22 = vshrl.u32 %v364_v21, 7  ;;  %vm610_vm1 = vcmask 261120   ;;  %s2007_s20 = smov 96  }
  0x5f   : > { %511 = vmatprep.subr.bf16.mxu0 %v1775_v5  ;;  %v329_v19 = vpack.c.bf16 %v2200_v18, %v2197_v17  ;;  %1604 = vmatprep.mubr.msk.bf16.mxu1 %vm2006_vm0, %v2005_v20  ;;  %v2216_v25 = vld [vmem:[%s2402_s2] sm:$0x7]  ;;  %v1793_v39 = vld [vmem:[#allocation5 + $0xb0] ss:$12 sps:$4 sm:$0xff]   ;;  %v1794_v40 = vld [vmem:[#allocation5 + $0x98] ss:$12 sps:$4 sm:$0xff]  }
  0x60   : > { %v370_v23 = vsub.s32 1, %v2210_v22  ;;  %v366_v27 = vsub.s32 0, %v2210_v22  ;;  %1589 = vmatpush3.bf16.msra.mxu1 %v1793_v39  ;;  %v1795_v41 = vld [vmem:[#allocation5 + $0x80] ss:$12 sps:$4 sm:$0xff]   ;;  %v1796_v42 = vld [vmem:[#allocation5 + $0x68] ss:$12 sps:$4 sm:$0xff]  }
  0x61   : > { %1590 = vmatprep.subr.bf16.mxu1 %v2005_v20  ;;  %v1797_v43 = vld [vmem:[#allocation5 + $0x50] ss:$12 sps:$4 sm:$0xff]   ;;  %v1798_v44 = vld [vmem:[#allocation5 + $0x38] ss:$12 sps:$4 sm:$0xff]   ;;  %v1799_v45 = vld [vmem:[#allocation5 + $0x20] ss:$12 sps:$4 sm:$0xff]  }
  0x62   : > { %512 = vmatpush1.bf16.msra.mxu0 %v1777_v6  ;;  %v371_v28 = vrot.slane %v2216_v25, %v370_v23  ;;  %v367_v31 = vrot.slane %v2216_v25, %v366_v27  ;;  %v1800_v46 = vld [vmem:[#allocation5 + $0x8] ss:$12 sps:$4 sm:$0xff]   ;;  %vm658_vm2 = vcmask 130048   ;;  %s2008_s22 = smov 64   ;;  %v374_v4 = vsub.s32 2, %v2210_v22  ;;  %v1803_v39 = vld [vmem:[#allocation7 + $0x18] sm:$0xff]  }
  0x63   : > { %513 = vmatprep.subr.bf16.mxu0 %v1778_v7  ;;  %s2009_s23 = smov 32   ;;  %s1550_s18 = sshll.u32 %s2074_s28, 8 }
  0x64   : > { %1591 = vmatpush3.bf16.msra.mxu1 %v1794_v40  ;;  %v375_v6 = vrot.slane %v2216_v25, %v374_v4  ;;  %s325_s19 = scalar_lea.vmem [#allocation8], %s1493_s1  ;;  %p2425_p10 = scmp.ne.s32.totalorder %s2419_s16, 0 }
  0x65   : > { %1592 = vmatprep.subr.bf16.mxu1 %v2005_v20  ;;  %s1392_s30 = sshll.u32 %s325_s19, 4  ;;  %s2010_s28 = smov [#allocation8]   ;;  %s2357_s30 = int_to_ptr.vmem [resolvable:$true] %s1392_s30 }
  0x66   : > { %514 = vmatpush1.bf16.msra.mxu0 %v1780_v8  ;;  %s1925_s29 = scalar_lea.vmem %s2357_s30, 256  ;;  %s1929_s1 = sshll.u32 %s2010_s28, 4  ;;  %s1930_s1 = int_to_ptr.vmem [resolvable:$false] %s1929_s1 }
  0x67   : > { %515 = vmatprep.subr.bf16.mxu0 %v1781_v9  ;;  %p1926_p11 = scmp.ne.s32.totalorder %s2357_s30, %s1925_s29  ;;  %s1931_s12 = scalar_lea.vmem %s1930_s1, 512 }
  0x68   : > { %1593 = vmatpush3.bf16.msra.mxu1 %v1795_v41  ;;  %p1932_p6 = scmp.lt.s32.totalorder %s2357_s30, %s1930_s1  ;;  %p1933_p12 = scmp.lt.s32.totalorder %s1931_s12, %s1925_s29 }
  0x69   : > { %1594 = vmatprep.subr.bf16.mxu1 %v2005_v20  ;;  %p1927_p1 = pnand %p1926_p11, %p2425_p10 }
  0x6a   : > { %516 = vmatpush1.bf16.msra.mxu0 %v1783_v10  ;;  %p1934_p3 = por %p1933_p12, %p1932_p6 }
  0x6b   : > { %517 = vmatprep.subr.bf16.mxu0 %v1784_v11  ;;  %p1928_p2 = pneg %p1927_p1 }
  0x6c   : > { %1595 = vmatpush3.bf16.msra.mxu1 %v1796_v42 }
  0x6d   : > { %1596 = vmatprep.subr.bf16.mxu1 %v2005_v20  ;;  %p1935_p9 = pnand %p1934_p3, %p1928_p2 }
  0x6e   : > { %518 = vmatpush1.bf16.msra.mxu0 %v1786_v12 }
  0x6f   : > { %519 = vmatprep.subr.bf16.mxu0 %v1787_v13 }
  0x70   : > { %1597 = vmatpush3.bf16.msra.mxu1 %v1797_v43 }
  0x71   : > { %1598 = vmatprep.subr.bf16.mxu1 %v2005_v20 }
  0x72   : > { %520 = vmatpush1.bf16.msra.mxu0 %v1789_v14 }
  0x73   : > { %521 = vmatprep.subr.bf16.mxu0 %v1790_v15 }
  0x74   : > { %1599 = vmatpush3.bf16.msra.mxu1 %v1798_v44 }
  0x75   : > { %1600 = vmatprep.subr.bf16.mxu1 %v2005_v20 }
  0x76   : > { %522 = vmatpush1.bf16.msra.mxu0 %v1792_v16 }
  0x77   : > { %1608 = vmatprep.subr.bf16.mxu0 %v2005_v20 }
  0x78   : > { %1601 = vmatpush3.bf16.msra.mxu1 %v1799_v45 }
  0x79   : > { %540 = vmatmul.mubr.bf16.vlgmr.msra.gmra.mxu0 %v329_v19  ;;  %1602 = vmatprep.subr.bf16.mxu1 %v2005_v20 }
  0x7a   : > { %1610 = vmatprep.mubr.msk.bf16.mxu0 %vm2006_vm0, %v2005_v20 }
  0x7c   : > { %1603 = vmatpush3.bf16.msra.mxu1 %v1800_v46 }
  0x7d   : > { %1614 = vmatprep.subr.bf16.mxu1 %v2005_v20 }
  0x7f   : > { %1605 = vmatmul.mubr.bf16.vlgmr.msra.gmra.mxu1 %v329_v19 }
  0x80   : > { %1616 = vmatprep.mubr.msk.bf16.mxu1 %vm2006_vm0, %v2005_v20 }
 0x139   : > { %v541_v24 = vpop.f32.mrf.mxu0 }
 0x13a   : > { %v542_v36 = vadd.f32 %v541_v24, %v367_v31 }
 0x13b   : > { %v543_v26 = vpop.f32.mrf.mxu0 }
 0x13c   : > { %v544_v32 = vadd.f32 %v543_v26, %v371_v28 }
 0x13d   : > { %v545_v29 = vpop.f32.mrf.mxu0 }
 0x13e   : > { %v546_v34 = vadd.f32 %v545_v29, %v367_v31 }
 0x13f   : > { %v547_v30 = vpop.f32.mrf.mxu0  ;;  %v584_v5 = vpop.f32.mrf.mxu1 }
 0x140   : > { %v548_v33 = vadd.f32 %v547_v30, %v371_v28  ;;  %v2227_v38 = vpack.c.bf16 %v546_v34, %v542_v36  ;;  %v585_v8 = vadd.f32 %v584_v5, %v375_v6 }
 0x141   : > { %v1606_v7 = vpop.f32.mrf.mxu1 }
 0x142   : > { %v2221_v35 = vpack.c.bf16 %v548_v33, %v544_v32 }
 0x143   : > { %v587_v9 = vpop.f32.mrf.mxu1 }
 0x144   : > { %731 = vrot.lane.b32.xlu0 %v2221_v35, %s2007_s20  ;;  %v615_v37 = vsel %vm610_vm1, %v2221_v35, 0  ;;  %v588_v10 = vadd.f32 %v587_v9, %v375_v6 }
 0x145   : > { %1609 = vmatpush3.bf16.xpose.msra.mxu0 %v615_v37  ;;  %v1607_v11 = vpop.f32.mrf.mxu1 }
 0x146   : > { %1620 = vmatprep.subr.bf16.mxu0 %v2005_v20  ;;  %v2259_v13 = vpack.c.bf16 %v588_v10, %v585_v8 }
 0x148   : > { %728 = vrot.lane.b32.xlu0 %v2227_v38, %s2007_s20  ;;  %1615 = vmatpush3.bf16.msra.mxu1 %v2259_v13 }
 0x149   : > { %1626 = vmatprep.subr.bf16.mxu1 %v2005_v20 }
 0x14c   : > { %1611 = vmatmul.mubr.msk.bf16.vlgmr.msra.gmra.mxu0 %vm610_vm1, %v2227_v38 }
 0x14d   : > { %1622 = vmatprep.mubr.msk.bf16.mxu0 %vm2006_vm0, %v2005_v20 }
 0x1b6   : > { %v732_v47 = vpop.permute.xlu0 %731 }
 0x1b7   : > { %v737_v48 = vsel %vm610_vm1, %v732_v47, 0  ;;  %v1801_v47 = vld [vmem:[#allocation7 + $0x8] sm:$0xff]  }
 0x1b8   : > { %1621 = vmatpush3.bf16.xpose.msra.mxu0 %v737_v48 }
 0x1b9   : > { %1632 = vmatprep.subr.bf16.mxu0 %v2005_v20 }
 0x1ba   : > { %v729_v49 = vpop.permute.xlu0 %728 }
 0x1bf   : > { %1623 = vmatmul.mubr.msk.bf16.vlgmr.msra.gmra.mxu0 %vm610_vm1, %v729_v49  ;;  %v1802_v49 = vld [vmem:[#allocation7] sm:$0xff]  }
 0x1c0   : > { %1636 = vmatprep.mubr.msk.bf16.mxu0 %vm2006_vm0, %v2005_v20  ;;  %1633 = vmatpush3.bf16.msra.mxu0 %v1803_v39 }
 0x1c1   : > { %1634 = vmatprep.subr.bf16.mxu0 %v2005_v20 }
 0x20c   : > { %v651_v50 = vpop.f32.mrf.mxu0 }
 0x20d   : > { %v659_v51 = vsel %vm658_vm2, %v651_v50, -inf }
 0x20e   : > { %660 = vmax.xlane.f32.xlu1 %v659_v51  ;;  %v1612_v52 = vpop.f32.mrf.mxu0 }
 0x210   : > { %v654_v53 = vpop.f32.mrf.mxu0 }
 0x211   : > { %v662_v54 = vsel %vm658_vm2, %v654_v53, -inf }
 0x212   : > { %663 = vmax.xlane.f32.xlu1 %v662_v54  ;;  %v1613_v55 = vpop.f32.mrf.mxu0 }
 0x27f   : > { %v773_v56 = vpop.f32.mrf.mxu0 }
 0x280   : > { %v780_v57 = vsel %vm658_vm2, %v773_v56, -inf }
 0x281   : > { %781 = vmax.xlane.f32.xlu0 %v780_v57  ;;  %v1624_v58 = vpop.f32.mrf.mxu0 }
 0x283   : > { %v776_v59 = vpop.f32.mrf.mxu0 }
 0x284   : > { %v783_v60 = vsel %vm658_vm2, %v776_v59, -inf }
 0x285   : > { %784 = vmax.xlane.f32.xlu1 %v783_v60  ;;  %v1625_v61 = vpop.f32.mrf.mxu0 }
 0x297   : > { %v661_v62 = vpop.xlane.xlu1 %660  ;;  %966 = vrot.lane.b32.xlu0 %v2221_v35, %s2008_s22 }
 0x298   : > { %v665_v63 = vsub.f32 %v651_v50, %v661_v62  ;;  %v1804_v50 = vld [vmem:[#allocation7 + $0x10] sm:$0xff]  }
 0x299   : > { %1635 = vmatpush3.bf16.msra.mxu0 %v1804_v50 }
 0x29a   : > { %v667_v0 = vmul.f32 1.442695, %v665_v63  ;;  %1648 = vmatprep.subr.bf16.mxu0 %v2005_v20 }
 0x29b   : > { %v664_v1 = vpop.xlane.xlu1 %663 }
 0x29c   : > { %1809 = vpow2.f32 %v667_v0  ;;  %v666_v2 = vsub.f32 %v654_v53, %v664_v1 }
 0x29e   : > { %v669_v3 = vmul.f32 1.442695, %v666_v2 }
 0x2a0   : > { %1811 = vpow2.f32 %v669_v3 }
 0x2a9   : > { %v1810_v12 = vpop.eup %1809 }
 0x2aa   : > { %v671_v14 = vsel %vm658_vm2, %v1810_v12, 0.0 }
 0x2ab   : > { %672 = vadd.xlane.f32.xlu1 %v671_v14 }
 0x2ad   : > { %v1812_v15 = vpop.eup %1811 }
 0x2ae   : > { %v674_v16 = vsel %vm658_vm2, %v1812_v15, 0.0 }
 0x2af   : > { %675 = vadd.xlane.f32.xlu1 %v674_v16 }
 0x30a   : > { %v782_v19 = vpop.xlane.xlu0 %781 }
 0x30b   : > { %v786_v21 = vsub.f32 %v773_v56, %v782_v19 }
 0x30d   : > { %v788_v22 = vmul.f32 1.442695, %v786_v21 }
 0x30e   : > { %v785_v23 = vpop.xlane.xlu1 %784  ;;  %v967_v58 = vpop.permute.xlu0 %966 }
 0x30f   : > { %1813 = vpow2.f32 %v788_v22  ;;  %v787_v24 = vsub.f32 %v776_v59, %v785_v23  ;;  %v972_v62 = vsel %vm610_vm1, %v967_v58, 0 }
 0x311   : > { %v790_v25 = vmul.f32 1.442695, %v787_v24 }
 0x313   : > { %1815 = vpow2.f32 %v790_v25 }
 0x31c   : > { %v1814_v26 = vpop.eup %1813 }
 0x31d   : > { %v792_v27 = vsel %vm658_vm2, %v1814_v26, 0.0 }
 0x31e   : > { %793 = vadd.xlane.f32.xlu1 %v792_v27 }
 0x320   : > { %v1816_v28 = vpop.eup %1815 }
 0x321   : > { %v795_v29 = vsel %vm658_vm2, %v1816_v28, 0.0 }
 0x322   : > { %796 = vadd.xlane.f32.xlu1 %v795_v29 }
 0x333   : > { %804 = vrot.lane.b32.xlu1 %v2259_v13, %s2007_s20 }
 0x334   : > { %v673_v30 = vpop.xlane.xlu1 %672 }
 0x335   : > { %1817 = vrcp.f32 %v673_v30 }
 0x337   : > { %964 = vrot.lane.b32.xlu1 %v2227_v38, %s2008_s22 }
 0x338   : > { %v676_v31 = vpop.xlane.xlu1 %675 }
 0x339   : > { %1819 = vrcp.f32 %v676_v31 }
 0x342   : > { %v1818_v32 = vpop.eup %1817 }
 0x343   : > { %v679_v34 = vmul.f32 %v1818_v32, %v1810_v12 }
 0x346   : > { %v1820_v33 = vpop.eup %1819 }
 0x347   : > { %v680_v36 = vmul.f32 %v1820_v33, %v1812_v15 }
 0x349   : > { %v681_v37 = vpack.c.bf16 %v680_v36, %v679_v34 }
 0x34b   : > { %1617 = vmatmul.mubr.msk.bf16.vlgmr.msra.gmra.mxu1 %vm658_vm2, %v681_v37 }
 0x34c   : > { %1628 = vmatprep.mubr.msk.bf16.mxu1 %vm2006_vm0, %v2005_v20 }
 0x3a7   : > { %v794_v40 = vpop.xlane.xlu1 %793 }
 0x3a8   : > { %1821 = vrcp.f32 %v794_v40  ;;  %v1806_v40 = vld [vmem:[#allocation7 + $0x20] sm:$0xff]  }
 0x3ab   : > { %v797_v41 = vpop.xlane.xlu1 %796 }
 0x3ac   : > { %1823 = vrcp.f32 %v797_v41 }
 0x3af   : > { %v805_v42 = vpop.permute.xlu1 %804 }
 0x3b0   : > { %1627 = vmatpush3.bf16.msra.mxu1 %v805_v42 }
 0x3b1   : > { %1640 = vmatprep.subr.bf16.mxu1 %v2005_v20 }
 0x3b3   : > { %v965_v63 = vpop.permute.xlu1 %964 }
 0x3b5   : > { %v1822_v43 = vpop.eup %1821 }
 0x3b6   : > { %v800_v45 = vmul.f32 %v1822_v43, %v1814_v26 }
 0x3b9   : > { %v1824_v44 = vpop.eup %1823 }
 0x3ba   : > { %v801_v46 = vmul.f32 %v1824_v44, %v1816_v28 }
 0x3bc   : > { %v802_v48 = vpack.c.bf16 %v801_v46, %v800_v45 }
 0x3be   : > { %1629 = vmatmul.mubr.msk.bf16.vlgmr.msra.gmra.mxu1 %vm658_vm2, %v802_v48 }
 0x3bf   : > { %1641 = vmatpush3.bf16.msra.mxu1 %v1801_v47  ;;  %1644 = vmatprep.mubr.msk.bf16.mxu1 %vm2006_vm0, %v2005_v20 }
 0x3c0   : > { %1642 = vmatprep.subr.bf16.mxu1 %v2005_v20 }
 0x3c3   : > { %1643 = vmatpush3.bf16.msra.mxu1 %v1802_v49 }
 0x3c4   : > { %1654 = vmatprep.subr.bf16.mxu1 %v2005_v20 }
 0x40b   : > { %v719_v51 = vpop.f32.mrf.mxu1 }
 0x40d   : > { %v1618_v52 = vpop.f32.mrf.mxu1 }
 0x40f   : > { %v722_v53 = vpop.f32.mrf.mxu1 }
 0x410   : > { %v726_v54 = vpack.c.bf16 %v722_v53, %v719_v51 }
 0x411   : > { %v1619_v55 = vpop.f32.mrf.mxu1 }
 0x412   : > { %1645 = vmatmul.mubr.msk.bf16.vlgmr.msra.gmra.mxu1 %vm610_vm1, %v726_v54 }
 0x413   : > { %1656 = vmatprep.mubr.msk.bf16.mxu1 %vm2006_vm0, %v2005_v20 }
 0x47e   : > { %v844_v56 = vpop.f32.mrf.mxu1 }
 0x480   : > { %v1630_v57 = vpop.f32.mrf.mxu1 }
 0x482   : > { %v847_v59 = vpop.f32.mrf.mxu1 }
 0x483   : > { %v851_v60 = vpack.c.bf16 %v847_v59, %v844_v56 }
 0x484   : > { %v1631_v61 = vpop.f32.mrf.mxu1 }
 0x485   : > { %1637 = vmatmul.mubr.msk.bf16.vlgmr.msra.gmra.mxu0 %vm610_vm1, %v851_v60 }
 0x486   : > { %1649 = vmatpush3.bf16.xpose.msra.mxu0 %v972_v62  ;;  %1650 = vmatprep.mubr.msk.bf16.mxu0 %vm2006_vm0, %v2005_v20 }
 0x487   : > { %1660 = vmatprep.subr.bf16.mxu0 %v2005_v20 }
 0x48d   : > { %1651 = vmatmul.mubr.msk.bf16.vlgmr.msra.gmra.mxu0 %vm610_vm1, %v965_v63 }
 0x48e   : > { %1664 = vmatprep.mubr.msk.bf16.mxu0 %vm2006_vm0, %v2005_v20 }
 0x4d2   : > { %v2293_v0 = vpop.f32.mrf.mxu1 }
 0x4d4   : > { %v1646_v1 = vpop.f32.mrf.mxu1 }
 0x4d6   : > { %v2295_v2 = vpop.f32.mrf.mxu1 }
 0x4d8   : > { %v1647_v3 = vpop.f32.mrf.mxu1 }
 0x545   : > { %v2297_v4 = vpop.f32.mrf.mxu0 }
 0x547   : > { %v1638_v5 = vpop.f32.mrf.mxu0 }
 0x549   : > { %v2299_v6 = vpop.f32.mrf.mxu0 }
 0x54a   : > { %v961_v5 = vadd.f32 %v2295_v2, %v2299_v6 }
 0x54b   : > { %v1639_v7 = vpop.f32.mrf.mxu0 }
 0x54d   : > { %v1008_v8 = vpop.f32.mrf.mxu0 }
 0x54e   : > { %v1015_v9 = vsel %vm658_vm2, %v1008_v8, -inf }
 0x54f   : > { %1016 = vmax.xlane.f32.xlu1 %v1015_v9  ;;  %v1652_v10 = vpop.f32.mrf.mxu0 }
 0x551   : > { %v1011_v11 = vpop.f32.mrf.mxu0 }
 0x552   : > { %v1018_v12 = vsel %vm658_vm2, %v1011_v11, -inf }
 0x553   : > { %1019 = vmax.xlane.f32.xlu0 %v1018_v12  ;;  %v1653_v14 = vpop.f32.mrf.mxu0 }
 0x569   : > { %1038 = vrot.lane.b32.xlu0 %v2259_v13, %s2008_s22  ;;  %s2355_s22 = scalar_lea.hbm %s2407_s7, %s1550_s18 }
 0x5d8   : > { %v1017_v15 = vpop.xlane.xlu1 %1016 }
 0x5d9   : > { %v1021_v16 = vsub.f32 %v1008_v8, %v1017_v15 }
 0x5db   : > { %v1023_v19 = vmul.f32 1.442695, %v1021_v16 }
 0x5dc   : > { %v1020_v21 = vpop.xlane.xlu0 %1019 }
 0x5dd   : > { %1825 = vpow2.f32 %v1023_v19  ;;  %v1022_v22 = vsub.f32 %v1011_v11, %v1020_v21 }
 0x5df   : > { %v1025_v23 = vmul.f32 1.442695, %v1022_v22 }
 0x5e0   : > { %v1039_v24 = vpop.permute.xlu0 %1038 }
 0x5e1   : > { %1827 = vpow2.f32 %v1025_v23  ;;  %1655 = vmatpush3.bf16.msra.mxu1 %v1039_v24 }
 0x5e2   : > { %1668 = vmatprep.subr.bf16.mxu1 %v2005_v20 }
 0x5ea   : > { %v1826_v25 = vpop.eup %1825 }
 0x5eb   : > { %v1027_v26 = vsel %vm658_vm2, %v1826_v25, 0.0 }
 0x5ec   : > { %1028 = vadd.xlane.f32.xlu1 %v1027_v26 }
 0x5ee   : > { %v1828_v27 = vpop.eup %1827 }
 0x5ef   : > { %v1030_v28 = vsel %vm658_vm2, %v1828_v27, 0.0 }
 0x5f0   : > { %1031 = vadd.xlane.f32.xlu1 %v1030_v28 }
 0x601   : > { %1146 = vrot.lane.b32.xlu1 %v2221_v35, %s2009_s23 }
 0x605   : > { %1144 = vrot.lane.b32.xlu1 %v2227_v38, %s2009_s23  ;;  %v1805_v38 = vld [vmem:[#allocation7 + $0x28] sm:$0xff]  }
 0x606   : > { %1661 = vmatpush3.bf16.msra.mxu0 %v1805_v38 }
 0x607   : > { %1662 = vmatprep.subr.bf16.mxu0 %v2005_v20 }
 0x60a   : > { %1663 = vmatpush3.bf16.msra.mxu0 %v1806_v40 }
 0x60b   : > { %1674 = vmatprep.subr.bf16.mxu0 %v2005_v20 }
 0x675   : > { %v1029_v29 = vpop.xlane.xlu1 %1028 }
 0x676   : > { %1829 = vrcp.f32 %v1029_v29 }
 0x679   : > { %v1032_v30 = vpop.xlane.xlu1 %1031 }
 0x67a   : > { %1831 = vrcp.f32 %v1032_v30 }
 0x67d   : > { %v1147_v36 = vpop.permute.xlu1 %1146 }
 0x67e   : > { %v1152_v39 = vsel %vm610_vm1, %v1147_v36, 0 }
 0x681   : > { %v1145_v35 = vpop.permute.xlu1 %1144 }
 0x683   : > { %v1830_v31 = vpop.eup %1829 }
 0x684   : > { %v1035_v33 = vmul.f32 %v1830_v31, %v1826_v25  ;;  %v1541_v25 = vld [vmem:[%s2404_s4] ss:$0 sm:$0xff] }
 0x687   : > { %v1832_v32 = vpop.eup %1831 }
 0x688   : > { %v1036_v34 = vmul.f32 %v1832_v32, %v1828_v27 }
 0x68a   : > { %v1037_v37 = vpack.c.bf16 %v1036_v34, %v1035_v33 }
 0x68c   : > { %1657 = vmatmul.mubr.msk.bf16.vlgmr.msra.gmra.mxu1 %vm658_vm2, %v1037_v37 }
 0x68d   : > { %1669 = vmatpush3.bf16.xpose.msra.mxu1 %v1152_v39  ;;  %1670 = vmatprep.mubr.msk.bf16.mxu1 %vm2006_vm0, %v2005_v20 }
 0x68e   : > { %1680 = vmatprep.subr.bf16.mxu1 %v2005_v20 }
 0x694   : > { %1671 = vmatmul.mubr.msk.bf16.vlgmr.msra.gmra.mxu1 %vm610_vm1, %v1145_v35 }
 0x695   : > { %1684 = vmatprep.mubr.msk.bf16.mxu1 %vm2006_vm0, %v2005_v20 }
 0x74c   : > { %v1078_v41 = vpop.f32.mrf.mxu1 }
 0x74e   : > { %v1658_v42 = vpop.f32.mrf.mxu1 }
 0x750   : > { %v1081_v43 = vpop.f32.mrf.mxu1 }
 0x751   : > { %v1085_v44 = vpack.c.bf16 %v1081_v43, %v1078_v41 }
 0x752   : > { %v1659_v45 = vpop.f32.mrf.mxu1 }
 0x753   : > { %1665 = vmatmul.mubr.msk.bf16.vlgmr.msra.gmra.mxu0 %vm610_vm1, %v1085_v44 }
 0x754   : > { %v1188_v46 = vpop.f32.mrf.mxu1  ;;  %1676 = vmatprep.mubr.msk.bf16.mxu0 %vm2006_vm0, %v2005_v20 }
 0x755   : > { %v1195_v47 = vsel %vm658_vm2, %v1188_v46, -inf }
 0x756   : > { %1196 = vmax.xlane.f32.xlu0 %v1195_v47  ;;  %v1672_v48 = vpop.f32.mrf.mxu1  ;;  %v1542_v47 = vld [vmem:[%s2405_s5] ss:$0 sm:$0xff] }
 0x758   : > { %v1191_v49 = vpop.f32.mrf.mxu1 }
 0x759   : > { %v1198_v50 = vsel %vm658_vm2, %v1191_v49, -inf }
 0x75a   : > { %1199 = vmax.xlane.f32.xlu1 %v1198_v50  ;;  %v1673_v51 = vpop.f32.mrf.mxu1 }
 0x76b   : > { %1218 = vrot.lane.b32.xlu1 %v2259_v13, %s2009_s23  ;;  %v958_v13 = vadd.f32 %v2293_v0, %v2297_v4  ;;  %v1807_v0 = vld [vmem:[#allocation7 + $0x38] sm:$0xff]   ;;  %v1808_v4 = vld [vmem:[#allocation7 + $0x30] sm:$0xff]   ;;  %s1379_s23 = scalar_lea.sflag [#allocation4], %s2180_s17 }
 0x76c   : > { %1681 = vmatpush3.bf16.msra.mxu1 %v1807_v0 }
 0x76d   : > { %1682 = vmatprep.subr.bf16.mxu1 %v2005_v20 }
 0x770   : > { %1683 = vmatpush3.bf16.msra.mxu1 %v1808_v4 }
 0x7df   : > { %v1197_v52 = vpop.xlane.xlu0 %1196 }
 0x7e0   : > { %v1201_v53 = vsub.f32 %v1188_v46, %v1197_v52 }
 0x7e2   : > { %v1203_v54 = vmul.f32 1.442695, %v1201_v53 }
 0x7e3   : > { %v1200_v55 = vpop.xlane.xlu1 %1199 }
 0x7e4   : > { %1833 = vpow2.f32 %v1203_v54  ;;  %v1202_v56 = vsub.f32 %v1191_v49, %v1200_v55  ;;  %v1543_v49 = vld [vmem:[%s2406_s6] ss:$0 sm:$0xff] }
 0x7e6   : > { %v1205_v57 = vmul.f32 1.442695, %v1202_v56 }
 0x7e7   : > { %v1219_v58 = vpop.permute.xlu1 %1218 }
 0x7e8   : > { %1835 = vpow2.f32 %v1205_v57  ;;  %1675 = vmatpush3.bf16.msra.mxu0 %v1219_v58 }
 0x7f1   : > { %v1834_v59 = vpop.eup %1833 }
 0x7f2   : > { %v1207_v60 = vsel %vm658_vm2, %v1834_v59, 0.0 }
 0x7f3   : > { %1208 = vadd.xlane.f32.xlu0 %v1207_v60 }
 0x7f5   : > { %v1836_v61 = vpop.eup %1835 }
 0x7f6   : > { %v1210_v62 = vsel %vm658_vm2, %v1836_v61, 0.0 }
 0x7f7   : > { %1211 = vadd.xlane.f32.xlu0 %v1210_v62 }
 0x813   : > { %v1135_v63 = vpop.f32.mrf.mxu0 }
 0x814   : > { %v1142_v1 = vadd.f32 %v1135_v63, %v958_v13 }
 0x815   : > { %v1666_v3 = vpop.f32.mrf.mxu0 }
 0x817   : > { %v1138_v7 = vpop.f32.mrf.mxu0 }
 0x818   : > { %v1143_v8 = vadd.f32 %v1138_v7, %v961_v5 }
 0x819   : > { %v1667_v9 = vpop.f32.mrf.mxu0 }
 0x87c   : > { %v1209_v10 = vpop.xlane.xlu0 %1208 }
 0x87d   : > { %1837 = vrcp.f32 %v1209_v10 }
 0x880   : > { %v1212_v11 = vpop.xlane.xlu0 %1211 }
 0x881   : > { %1839 = vrcp.f32 %v1212_v11 }
 0x88a   : > { %v1838_v12 = vpop.eup %1837 }
 0x88b   : > { %v1215_v15 = vmul.f32 %v1838_v12, %v1834_v59 }
 0x88e   : > { %v1840_v14 = vpop.eup %1839 }
 0x88f   : > { %v1216_v16 = vmul.f32 %v1840_v14, %v1836_v61 }
 0x891   : > { %v1217_v19 = vpack.c.bf16 %v1216_v16, %v1215_v15 }
 0x893   : > { %1677 = vmatmul.mubr.msk.bf16.vlgmr.msra.gmra.mxu0 %vm658_vm2, %v1217_v19 }
 0x953   : > { %v1258_v2 = vpop.f32.mrf.mxu0 }
 0x955   : > { %v1678_v6 = vpop.f32.mrf.mxu0 }
 0x957   : > { %v1261_v21 = vpop.f32.mrf.mxu0 }
 0x958   : > { %v1265_v22 = vpack.c.bf16 %v1261_v21, %v1258_v2 }
 0x959   : > { %v1679_v23 = vpop.f32.mrf.mxu0 }
 0x95a   : > { %1685 = vmatmul.mubr.msk.bf16.vlgmr.msra.gmra.mxu1 %vm610_vm1, %v1265_v22 }
 0xa1a   : > { %v1315_v24 = vpop.f32.mrf.mxu1 }
 0xa1b   : > { %v1322_v26 = vadd.f32 %v1315_v24, %v1142_v1 }
 0xa1c   : > { %v1686_v27 = vpop.f32.mrf.mxu1 }
 0xa1d   : > { %v1331_v28 = vadd.f32 %v1541_v25, %v1322_v26 }
 0xa1e   : > { %v1318_v29 = vpop.f32.mrf.mxu1 }
 0xa1f   : > { %v1323_v30 = vadd.f32 %v1318_v29, %v1143_v8  ;;  %v1333_v20 = vadd.f32 %v1331_v28, %v2197_v17 }
 0xa20   : > { %v1687_v31 = vpop.f32.mrf.mxu1 }
 0xa21   : > { %v1332_v32 = vadd.f32 %v1541_v25, %v1323_v30  ;;  %1337 = vadd.xlane.f32.xlu0 %v1333_v20 }
 0xa23   : > { %v1334_v33 = vadd.f32 %v1332_v32, %v2200_v18 }
 0xa25   : > { %1339 = vadd.xlane.f32.xlu0 %v1334_v33 }
 0xaaa   : > { %v1338_v34 = vpop.xlane.xlu0 %1337 }
 0xaab   : > { %v1342_v36 = vmul.f32 0.0078125, %v1338_v34 }
 0xaad   : > { %v1344_v37 = vsub.f32 %v1333_v20, %v1342_v36 }
 0xaae   : > { %v1340_v39 = vpop.xlane.xlu0 %1339 }
 0xaaf   : > { %v1343_v35 = vmul.f32 0.0078125, %v1340_v39  ;;  %v1346_v38 = vmul.f32 %v1344_v37, %v1344_v37 }
 0xab1   : > { %v1345_v40 = vsub.f32 %v1334_v33, %v1343_v35  ;;  %1348 = vadd.xlane.f32.xlu0 %v1346_v38 }
 0xab3   : > { %v1347_v41 = vmul.f32 %v1345_v40, %v1345_v40 }
 0xab5   : > { %1350 = vadd.xlane.f32.xlu0 %v1347_v41 }
 0xb3a   : > { %v1349_v42 = vpop.xlane.xlu0 %1348 }
 0xb3b   : > { %v1352_v43 = vmul.f32 0.0078125, %v1349_v42 }
 0xb3d   : > { %v1354_v17 = vadd.f32 1e-05, %v1352_v43 }
 0xb3e   : > { %v1351_v44 = vpop.xlane.xlu0 %1350 }
 0xb3f   : > { %1841 = vrsqrt.f32 %v1354_v17  ;;  %v1353_v45 = vmul.f32 0.0078125, %v1351_v44 }
 0xb41   : > { %v1355_v18 = vadd.f32 1e-05, %v1353_v45 }
 0xb43   : > { %1843 = vrsqrt.f32 %v1355_v18 }
 0xb4c   : > { %v1842_v46 = vpop.eup %1841 }
 0xb4d   : > { %v1358_v48 = vmul.f32 %v1842_v46, %v1344_v37 }
 0xb4f   : > { %v1366_v50 = vmul.f32 %v1542_v47, %v1358_v48 }
 0xb50   : > { %v1844_v51 = vpop.eup %1843 }
 0xb51   : > { %v1374_v52 = vadd.f32 %v1543_v49, %v1366_v50  ;;  %v1359_v53 = vmul.f32 %v1844_v51, %v1345_v40 }
 0xb53   : > { %v1367_v54 = vmul.f32 %v1542_v47, %v1359_v53  ;;  %1376 = vst [vmem:[%s325_s19] sm:$0xff] %v1374_v52 }
 0xb55   : > { %v1375_v55 = vadd.f32 %v1543_v49, %v1367_v54 }
 0xb57   : > { %1377 = vst [vmem:[%s325_s19 + $0x8] sm:$0xff] %v1375_v55 }
 0xb58   : > { %1938 = shalt.err (!%p1935_p9)
}
 0xb59   : > { %s1939_s21 = scalar_lea.hbm %s2355_s22, 256  ;;  %s1943_s14 = scalar_lea.hbm %s2407_s7, 512 }
 0xb5a   : > { %p1940_p13 = scmp.ne.s32.totalorder %s2355_s22, %s1939_s21  ;;  %p1944_p4 = scmp.lt.s32.totalorder %s2355_s22, %s2407_s7 }
 0xb5b   : > { %p1945_p8 = scmp.lt.s32.totalorder %s1943_s14, %s1939_s21 }
 0xb5c   : > { %p1941_p5 = pnand %p1940_p13, %p2425_p10 }
 0xb5d   : > { %p1946_p7 = por %p1945_p8, %p1944_p4 }
 0xb5e   : > { %p1942_p0 = pneg %p1941_p5 }
 0xb60   : > { %p1947_p11 = pnand %p1946_p7, %p1942_p0 }
 0xb62   : > { %1950 = shalt.err (!%p1947_p11)
}
 0xb63   : > { %s2011_s9 = smov 128   ;;  %s2012_s20 = smov 8  }
 0xb64   : > { %1698 = dma.vmem_to_hbm [thread:$0]  (%p2425_p10), %s2357_s30, 256, %s2355_s22, %s1379_s23, %s2011_s9, %s2011_s9, %s2012_s20  }
 0xb65 PF: > { %s1407_s29 = sand.u32 1, %s1981_s24   ;;  %p2426_p1 = scmp.ne.s32.totalorder %s2414_s8, 0 }
 0xb66   : > { %p2427_p2 = scmp.ge.s32.totalorder %s1993_s27, 2  ;;  %s1408_s28 = scalar_lea.sflag [#allocation4], %s1407_s29 }
 0xb68   : > { %p1712_p6 = pnand %p2427_p2, %p2426_p1 }
 0xb6a   : > { %p1713_p12 = pneg %p1712_p6 }
 0xb6c   : > { %1976 = dma.done.wait (%p1713_p12), %s1408_s28, 256  }
 0xb6d   : > { %1978 = vsyncadd (%p1713_p12), %s1408_s28, 4294967040  ;;  %p21_p3 = scmp.ge.s32.totalorder %s2125_s10, 4   ;;  %s2428_s24 = smov %s1985_s25 }
 0xb6e   : > { %s2429_s25 = smov %s1989_s26  ;;  %s2430_s26 = smov %s2134_s15 }
 0xb6f   : > { %s2431_s27 = smov %s2125_s10  ;;  %23 = sbr.rel (!%p21_p3) target bundleno = 8 (0x8), region = 101 }
 0xb74   :  { %1413 = vsyncpa [#allocation3], 1 }
 0xb75   :  { %1415 = vsyncpa [#allocation3 + $0x1], 1 }
 0xb76   :  { %1416 = vsyncpa [#allocation6], 1 }
 0xb77   :  { %1417 = vsyncpa [#allocation4], 1 }
 0xb78   :  { %1419 = vsyncpa [#allocation4 + $0x1], 1 }

</bundles_post_ra>
